<compile_context>
chip_gen: v5e
topology: v5e:2x2
jax: 0.10.0
libtpu: 0.0.40
codegen_flags: <defaults>
</compile_context>

<pallas_src>
import jax
import jax.numpy as jnp
from jax.experimental import pallas as pl
from jax.experimental.pallas import tpu as pltpu


def _round_up(x, m):
    return ((x + m - 1) // m) * m


def _cdiv(a, b):
    return -(-a // b)


def _vmem_limit_bytes():
    # Conservative fallback = v7x physical VMEM (64 MiB) so an un-queryable
    # environment never over-commits; v5e/v6e report 128 MiB and get more.
    cap = 64 * 1024 * 1024
    try:
        cap = int(pltpu.get_tpu_info().vmem_capacity_bytes)
    except Exception:
        pass
    # Leave headroom for compiler-internal scratch / semaphores.
    return min(cap * 5 // 8, 100 * 1024 * 1024)


# ----------------------------------------------------------------------------
# Kernels
# ----------------------------------------------------------------------------
def _ffn_kernel_resident(x_ref, w1_ref, b1_ref, w2_ref, b2_ref, o_ref):
    """Single F block: weights resident in VMEM, no accumulator needed."""
    h = jnp.dot(x_ref[...], w1_ref[...], preferred_element_type=jnp.float32)
    h = jnp.maximum(h + b1_ref[...], 0.0)
    out = jnp.dot(h.astype(w2_ref.dtype), w2_ref[...],
                  preferred_element_type=jnp.float32)
    o_ref[...] = (out + b2_ref[...]).astype(o_ref.dtype)


def _ffn_kernel_tiled_direct(x_ref, w1_ref, b1_ref, w2_ref, b2_ref, o_ref):
    """F tiled, f32 output: accumulate directly into the resident output block."""
    f = pl.program_id(1)

    @pl.when(f == 0)
    def _():
        # b2 is added exactly once, via the accumulator init.
        o_ref[...] = jnp.broadcast_to(b2_ref[...], o_ref.shape).astype(o_ref.dtype)

    h = jnp.dot(x_ref[...], w1_ref[...], preferred_element_type=jnp.float32)
    h = jnp.maximum(h + b1_ref[...], 0.0)
    o_ref[...] += jnp.dot(h.astype(w2_ref.dtype), w2_ref[...],
                          preferred_element_type=jnp.float32)


def _ffn_kernel_tiled_acc(x_ref, w1_ref, b1_ref, w2_ref, b2_ref, o_ref, acc_ref):
    """F tiled, narrow output dtype: f32 VMEM accumulator + finalize cast."""
    f = pl.program_id(1)

    @pl.when(f == 0)
    def _():
        acc_ref[...] = jnp.zeros_like(acc_ref)

    h = jnp.dot(x_ref[...], w1_ref[...], preferred_element_type=jnp.float32)
    h = jnp.maximum(h + b1_ref[...], 0.0)
    acc_ref[...] += jnp.dot(h.astype(w2_ref.dtype), w2_ref[...],
                            preferred_element_type=jnp.float32)

    @pl.when(f == pl.num_programs(1) - 1)
    def _():
        o_ref[...] = (acc_ref[...] + b2_ref[...]).astype(o_ref.dtype)


# ----------------------------------------------------------------------------
# Tile planner
# ----------------------------------------------------------------------------
def _plan_tiles(M, H, F, x_itemsize, out_itemsize, budget_bytes):
    """Pick (tm, tf, weights_resident) such that the working set fits VMEM."""
    M8 = _round_up(max(M, 1), 8)
    F128 = _round_up(F, 128)

    def footprint(tm, tf, resident, w_bufs):
        b = 0
        b += 2 * tm * H * x_itemsize              # x tile (double-buffered)
        b += 2 * tm * H * out_itemsize            # output tile
        b += 2 * w_bufs * tf * H * x_itemsize     # w1 + w2 tiles
        b += 2 * (tf + H) * x_itemsize            # biases
        b += tm * tf * 4                          # h intermediate (f32)
        if not resident and out_itemsize < 4:
            b += tm * H * 4                       # f32 accumulator scratch
        return b

    def balance(tm_cand):
        # Keep tm near the candidate while minimizing M-axis padding waste.
        gi = _cdiv(M8, tm_cand)
        return _round_up(_cdiv(M8, gi), 8)

    tm_top = min(512, M8)
    tm_cands = [tm_top] + [t for t in (384, 256, 128, 64, 32, 16, 8) if t < tm_top]

    # Fast path: whole (padded) F resident -> weights DMA'd once, no accumulator.
    for tm_cand in tm_cands:
        tm = balance(tm_cand)
        if footprint(tm, F128, True, 2) <= budget_bytes:
            return tm, F128, True

    # Tiled-F fallback: stream weight tiles (triple-buffered in the specs).
    for tf in (512, 256, 128):
        for tm_cand in tm_cands:
            tm = balance(tm_cand)
            if footprint(tm, tf, False, 3) <= budget_bytes:
                return tm, tf, False

    # Last resort: smallest tiles.
    return balance(8), 128, False


# ----------------------------------------------------------------------------
# Wrapper
# ----------------------------------------------------------------------------
def ffn_forward(x, w1, b1, w2, b2, *, compute_dtype=None):
    """Fused FFN: relu(x @ w1 + b1) @ w2 + b2 (dropout = identity / eval mode).

    x: [B, S, H]; w1: [H, F]; b1: [F]; w2: [F, H]; b2: [H].
    """
    B, S, H = x.shape
    F = w1.shape[1]
    M = B * S
    out_dtype = x.dtype

    if compute_dtype is not None:
        # bf16 operands: ~2-3x MXU throughput and half the DMA bytes on
        # v6e/v7x; accumulation stays f32 inside the kernel.
        x = x.astype(compute_dtype)
        w1 = w1.astype(compute_dtype)
        w2 = w2.astype(compute_dtype)

    x_itemsize = jnp.dtype(x.dtype).itemsize
    out_itemsize = jnp.dtype(out_dtype).itemsize

    vmem_limit = _vmem_limit_bytes()
    budget = (vmem_limit * 3) // 4
    tm, tf, resident = _plan_tiles(M, H, F, x_itemsize, out_itemsize, budget)

    M_pad = _round_up(M, tm)

    # Feed v7x's second TensorCore: guarantee >= 2 blocks on the parallel row
    # axis when it costs nothing (weights resident => no extra weight traffic).
    if resident and M_pad == tm and M_pad >= 16 and M_pad % 16 == 0:
        tm = M_pad // 2

    F_pad = _round_up(F, tf)
    grid_i = M_pad // tm
    grid_f = F_pad // tf

    x2d = x.reshape(M, H)
    if M_pad != M:
        x2d = jnp.pad(x2d, ((0, M_pad - M), (0, 0)))
    if F_pad != F:
        # Zero-padded ff columns contribute relu(0 + 0) @ 0 == 0 to the output.
        w1 = jnp.pad(w1, ((0, 0), (0, F_pad - F)))
        b1 = jnp.pad(b1, ((0, F_pad - F),))
        w2 = jnp.pad(w2, ((0, F_pad - F), (0, 0)))

    b1_2d = b1.reshape(1, F_pad)
    b2_2d = b2.reshape(1, H)

    # Deeper buffering on the streamed weight tiles only when F is tiled
    # (hides per-step weight-tile DMA latency, helps v5e most).
    w_pipeline = {} if resident else dict(pipeline_mode=pl.Buffered(3))
    in_specs = [
        pl.BlockSpec((tm, H), lambda i, f: (i, 0)),                 # x row tile
        pl.BlockSpec((H, tf), lambda i, f: (0, f), **w_pipeline),   # w1 col tile
        pl.BlockSpec((1, tf), lambda i, f: (0, f)),                 # b1 tile
        pl.BlockSpec((tf, H), lambda i, f: (f, 0), **w_pipeline),   # w2 row tile
        pl.BlockSpec((1, H), lambda i, f: (0, 0)),                  # b2
    ]
    out_specs = pl.BlockSpec((tm, H), lambda i, f: (i, 0))

    if grid_f == 1:
        kernel = _ffn_kernel_resident
        scratch_shapes = []
    elif jnp.dtype(out_dtype) == jnp.dtype(jnp.float32):
        kernel = _ffn_kernel_tiled_direct
        scratch_shapes = []
    else:
        kernel = _ffn_kernel_tiled_acc
        scratch_shapes = [pltpu.VMEM((tm, H), jnp.float32)]

    # Weights are re-streamed once per row-tile pass when F is tiled; exactly
    # once when they are resident (constant block index across the grid).
    weight_passes = 1 if grid_f == 1 else grid_i
    w_bytes = (w1.size + w2.size) * x_itemsize
    flops = 2 * M_pad * H * F_pad * 2  # two matmuls
    bytes_accessed = (
        M_pad * H * x_itemsize
        + weight_passes * w_bytes
        + b1_2d.size * jnp.dtype(b1_2d.dtype).itemsize
        + b2_2d.size * jnp.dtype(b2_2d.dtype).itemsize
        + M_pad * H * out_itemsize
    )

    out2d = pl.pallas_call(
        kernel,
        out_shape=jax.ShapeDtypeStruct((M_pad, H), out_dtype),
        grid_spec=pltpu.PrefetchScalarGridSpec(
            num_scalar_prefetch=0,
            grid=(grid_i, grid_f),
            in_specs=in_specs,
            out_specs=out_specs,
            scratch_shapes=scratch_shapes,
        ),
        compiler_params=pltpu.CompilerParams(
            dimension_semantics=("parallel", "arbitrary"),
            vmem_limit_bytes=vmem_limit,
        ),
        cost_estimate=pl.CostEstimate(
            flops=flops, transcendentals=0, bytes_accessed=bytes_accessed),
    )(x2d, w1, b1_2d, w2, b2_2d)

    if M_pad != M:
        out2d = out2d[:M]
    return out2d.reshape(B, S, H)


def reference_ffn(x, w1, b1, w2, b2):
    h = jnp.maximum(jnp.einsum("bsh,hf->bsf", x, w1) + b1, 0.0)
    return jnp.einsum("bsf,fh->bsh", h, w2) + b2


if __name__ == "__main__":
    # Small shapes implied by the module: hidden_size=32, ff_size=128
    batch, seq, hidden, ff = 2, 8, 32, 128

    key = jax.random.PRNGKey(0)
    kx, kw1, kb1, kw2, kb2 = jax.random.split(key, 5)

    # Deterministic synthetic parameters (scaled like PyTorch Linear init).
    x = jax.random.normal(kx, (batch, seq, hidden), dtype=jnp.float32)
    w1 = jax.random.uniform(kw1, (hidden, ff), jnp.float32,
                            minval=-1.0, maxval=1.0) / jnp.sqrt(hidden)
    b1 = jax.random.uniform(kb1, (ff,), jnp.float32,
                            minval=-1.0, maxval=1.0) / jnp.sqrt(hidden)
    w2 = jax.random.uniform(kw2, (ff, hidden), jnp.float32,
                            minval=-1.0, maxval=1.0) / jnp.sqrt(ff)
    b2 = jax.random.uniform(kb2, (hidden,), jnp.float32,
                            minval=-1.0, maxval=1.0) / jnp.sqrt(ff)

    out = ffn_forward(x, w1, b1, w2, b2)
    out = jax.block_until_ready(out)

    ref = reference_ffn(x, w1, b1, w2, b2)
    assert out.shape == (batch, seq, hidden)
    assert jnp.allclose(out, ref, atol=1e-5, rtol=1e-5), "mismatch vs reference"

    print("KERNEL_OK")
</pallas_src>

<mosaic_0001>
module attributes {stable_mosaic.version = 11 : i64} {
  func.func @_ffn_kernel_resident(%arg0: i32, %arg1: i32, %arg2: memref<8x32xf32, #tpu.memory_space<vmem>>, %arg3: memref<32x128xf32, #tpu.memory_space<vmem>>, %arg4: memref<1x128xf32, #tpu.memory_space<vmem>>, %arg5: memref<128x32xf32, #tpu.memory_space<vmem>>, %arg6: memref<1x32xf32, #tpu.memory_space<vmem>>, %arg7: memref<8x32xf32, #tpu.memory_space<vmem>>) attributes {dimension_semantics = [#tpu.dimension_semantics<parallel>, #tpu.dimension_semantics<arbitrary>], iteration_bounds = array<i64: 2, 1>, scalar_prefetch = 0 : i64, scratch_operands = 0 : i64, tpu.core_type = #tpu.core_type<tc>, window_params = [{transform_indices = @transform_0, window_bounds = array<i64: 8, 32>}, {transform_indices = @transform_1, window_bounds = array<i64: 32, 128>}, {transform_indices = @transform_2, window_bounds = array<i64: 1, 128>}, {transform_indices = @transform_3, window_bounds = array<i64: 128, 32>}, {pipeline_mode = #tpu.pipeline_mode<synchronous>, transform_indices = @transform_4, window_bounds = array<i64: 1, 32>}, {transform_indices = @transform_5, window_bounds = array<i64: 8, 32>}]} {
    %c0 = arith.constant 0 : index
    %c0_0 = arith.constant 0 : index
    %0 = vector.load %arg2[%c0, %c0_0] : memref<8x32xf32, #tpu.memory_space<vmem>>, vector<8x32xf32>
    %c0_1 = arith.constant 0 : index
    %c0_2 = arith.constant 0 : index
    %1 = vector.load %arg3[%c0_1, %c0_2] : memref<32x128xf32, #tpu.memory_space<vmem>>, vector<32x128xf32>
    %cst = arith.constant dense<0.000000e+00> : vector<8x128xf32>
    %2 = tpu.matmul %0, %1, %cst {dimension_numbers = #tpu.dot_dimension_numbers<[1], [0], [0], [1], [0, 0, 1, 1], [], []>} : vector<8x32xf32>, vector<32x128xf32>, vector<8x128xf32> -> vector<8x128xf32>
    %c0_3 = arith.constant 0 : index
    %c0_4 = arith.constant 0 : index
    %3 = vector.load %arg4[%c0_3, %c0_4] : memref<1x128xf32, #tpu.memory_space<vmem>>, vector<1x128xf32>
    %4 = vector.broadcast %3 : vector<1x128xf32> to vector<8x128xf32>
    %5 = arith.addf %2, %4 : vector<8x128xf32>
    %cst_5 = arith.constant 0.000000e+00 : f32
    %6 = vector.broadcast %cst_5 : f32 to vector<8x128xf32>
    %7 = arith.maximumf %5, %6 : vector<8x128xf32>
    %c0_6 = arith.constant 0 : index
    %c0_7 = arith.constant 0 : index
    %8 = vector.load %arg5[%c0_6, %c0_7] : memref<128x32xf32, #tpu.memory_space<vmem>>, vector<128x32xf32>
    %cst_8 = arith.constant dense<0.000000e+00> : vector<8x32xf32>
    %9 = tpu.matmul %7, %8, %cst_8 {dimension_numbers = #tpu.dot_dimension_numbers<[1], [0], [0], [1], [0, 0, 1, 1], [], []>} : vector<8x128xf32>, vector<128x32xf32>, vector<8x32xf32> -> vector<8x32xf32>
    %c0_9 = arith.constant 0 : index
    %c0_10 = arith.constant 0 : index
    %10 = vector.load %arg6[%c0_9, %c0_10] : memref<1x32xf32, #tpu.memory_space<vmem>>, vector<1x32xf32>
    %11 = vector.broadcast %10 : vector<1x32xf32> to vector<8x32xf32>
    %12 = arith.addf %9, %11 : vector<8x32xf32>
    %c0_11 = arith.constant 0 : index
    %c0_12 = arith.constant 0 : index
    %13 = vector.load %arg7[%c0_11, %c0_12] : memref<8x32xf32, #tpu.memory_space<vmem>>, vector<8x32xf32>
    tpu.vector_store %arg7[%c0_11, %c0_12], %12 {strides = array<i32>} : memref<8x32xf32, #tpu.memory_space<vmem>>, vector<8x32xf32>,
    return
  }
  func.func @transform_0(%arg0: i32, %arg1: i32) -> (i32, i32) {
    %c0_i32 = arith.constant 0 : i32
    %c0_i32_0 = arith.constant 0 : i32
    return %arg0, %c0_i32 : i32, i32
  }
  func.func @transform_1(%arg0: i32, %arg1: i32) -> (i32, i32) {
    %c0_i32 = arith.constant 0 : i32
    %c0_i32_0 = arith.constant 0 : i32
    return %c0_i32, %arg1 : i32, i32
  }
  func.func @transform_2(%arg0: i32, %arg1: i32) -> (i32, i32) {
    %c0_i32 = arith.constant 0 : i32
    %c0_i32_0 = arith.constant 0 : i32
    return %c0_i32, %arg1 : i32, i32
  }
  func.func @transform_3(%arg0: i32, %arg1: i32) -> (i32, i32) {
    %c0_i32 = arith.constant 0 : i32
    %c0_i32_0 = arith.constant 0 : i32
    return %arg1, %c0_i32 : i32, i32
  }
  func.func @transform_4(%arg0: i32, %arg1: i32) -> (i32, i32) {
    %c0_i32 = arith.constant 0 : i32
    %c0_i32_0 = arith.constant 0 : i32
    %c0_i32_1 = arith.constant 0 : i32
    return %c0_i32, %c0_i32_0 : i32, i32
  }
  func.func @transform_5(%arg0: i32, %arg1: i32) -> (i32, i32) {
    %c0_i32 = arith.constant 0 : i32
    %c0_i32_0 = arith.constant 0 : i32
    return %arg0, %c0_i32 : i32, i32
  }
}

</mosaic_0001>

<bundles_post_ra>
// kernel: tpu_custom_call.1
= control target key start
LH: loop header
LB: loop body
LE: loop exit
PB: predicated region body
PF: predicated region fallthrough
CT: control target
= control target key end

     0   :  { %10 = vsyncpa [#allocation3], 0  ;;  %s832_s0 = inlined_call_operand.vmem [shape: f32[16,32], index: 0, kind: input, shape index: {}]   ;;  %s833_s1 = inlined_call_operand.vmem [shape: f32[32,128], index: 1, kind: input, shape index: {}]   ;;  %s834_s2 = inlined_call_operand.vmem [shape: f32[1,128], index: 2, kind: input, shape index: {}]   ;;  %s835_s3 = inlined_call_operand.vmem [shape: f32[128,32], index: 3, kind: input, shape index: {}]   ;;  %s836_s4 = inlined_call_operand.vmem [shape: f32[1,32], index: 4, kind: input, shape index: {}]   ;;  %s837_s5 = inlined_call_operand.hbm [shape: f32[16,32], index: 5, kind: output, shape index: {}]  }
   0x1   :  { %12 = vsyncpa [#allocation3 + $0x1], 0  ;;  %s667_s18 = smov 0   ;;  %s669_s19 = smov 0  }
   0x2   :  { %s671_s20 = smov 0   ;;  %s673_s21 = smov 0  }
   0x3   :  { %s675_s22 = smov 0   ;;  %s677_s23 = smov 0  }
   0x4 LB: > { %s485_s24 = sadd.s32 4294967295, %s635_s23   ;;  %s486_s25 = sadd.s32 4294967294, %s635_s23   ;;  %s635_s23 = sphi %s677_s23, %s18_s23   ;;  %s631_s22 = sphi %s675_s22, %s844_s22   ;;  %s627_s21 = sphi %s673_s21, %s843_s21   ;;  %s623_s20 = sphi %s671_s20, %s842_s20   ;;  %s619_s19 = sphi %s669_s19, %s841_s19   ;;  %s615_s18 = sphi %s667_s18, %s840_s18  }
   0x5   : > { %s30_s26 = sadd.s32 1, %s631_s22  ;;  %s162_s27 = sadd.s32 1, %s623_s20 }
   0x6   : > { %p32_p0 = scmp.ge.s32.totalorder %s30_s26, 2  ;;  %p172_p1 = scmp.ne.s32.totalorder %s623_s20, %s619_s19 }
   0x7   : > { %p173_p2 = scmp.eq.s32.totalorder %s485_s24, 1  ;;  %p178_p3 = scmp.ne.s32.totalorder %s619_s19, %s615_s18 }
   0x8   : > { %s846_s26 = smov (%p32_p0, %s30_s26), 0  ;;  %p179_p5 = scmp.eq.s32.totalorder %s486_s25, 1 }
   0x9   : > { %p707_p4 = por %p173_p2, %p172_p1  ;;  %s159_s29 = ssub.s32 %s631_s22, %s846_s26 }
   0xa   : > { %p492_p6 = scmp.ge.s32.totalorder %s635_s23, 1  ;;  %p160_p7 = scmp.eq.s32.totalorder %s159_s29, 0 }
   0xb   : > { %p714_p8 = por %p179_p5, %p178_p3  ;;  %p229_p9 = scmp.lt.s32.totalorder %s635_s23, 3 }
   0xc   : > { %s720_s6 = scalar_select %p160_p7, %s623_s20, %s162_s27  }
   0xd   : > { %p230_p10 = pnand %p492_p6, %p229_p9 }
   0xe   : > { %p268_p11 = scmp.lt.s32.totalorder (!%p230_p10), %s627_s21, 1  ;;  %s265_s9 = sand.u32 (!%p230_p10), 1, %s619_s19  }
   0xf   : > { %233 = sbr.rel (%p230_p10) target bundleno = 289 (0x121), region = 40  ;;  %s497_s11 = sshll.u32 (!%p230_p10), %s627_s21, 3 }
  0x10   : > { %s371_s14 = scalar_lea.hbm (!%p230_p10), %s837_s5, %s497_s11  ;;  %s361_s27 = scalar_lea.sflag (!%p230_p10), [#allocation3], %s265_s9 }
  0x11   : > { %s375_s25 = sshll.u32 (!%p230_p10), %s371_s14, 4  ;;  %s376_s25 = int_to_ptr.hbm [resolvable:$true] %s375_s25 }
  0x14   : > { %v289_v0 = vld [vmem:[%s833_s1 + $0x18] sm:$0xff]  ;;  %v288_v1 = vld [vmem:[%s833_s1 + $0x10] sm:$0xff]  ;;  %v287_v4 = vld [vmem:[%s833_s1 + $0x8] sm:$0xff]  ;;  %s269_s17 = scalar_select %p268_p11, %s627_s21, 1  ;;  %vm294_vm0 = vcmask 261120  }
  0x15   : > { %310 = vmatpush.msra.mxu0 %v289_v0  ;;  %v334_v2 = vld [vmem:[%s835_s3 + $0x78] sm:$0xff]  ;;  %v333_v3 = vld [vmem:[%s835_s3 + $0x70] sm:$0xff]  ;;  %v332_v5 = vld [vmem:[%s835_s3 + $0x68] sm:$0xff]  ;;  %s571_s21 = sshra.s32 %s376_s25, 4  ;;  %s572_s21 = int_to_ptr.hbm [resolvable:$true] %s571_s21 }
  0x16   : > { %339 = vmatpush.msra.mxu1 %v334_v2  ;;  %v286_v6 = vld [vmem:[%s833_s1] sm:$0xff]  ;;  %s494_s7 = sshll.u32 %s269_s17, 3  ;;  %v330_v9 = vld [vmem:[%s835_s3 + $0x58] sm:$0xff]  ;;  %v329_v10 = vld [vmem:[%s835_s3 + $0x50] sm:$0xff]  ;;  %s573_s29 = scalar_lea.hbm %s572_s21, 8 }
  0x17   : > { %311 = vmatpush.msra.mxu0 %v288_v1  ;;  %s271_s10 = scalar_lea.vmem %s832_s0, %s494_s7  ;;  %v331_v7 = vld [vmem:[%s835_s3 + $0x60] sm:$0xff]  ;;  %v328_v11 = vld [vmem:[%s835_s3 + $0x48] sm:$0xff]  ;;  %v326_v13 = vld [vmem:[%s835_s3 + $0x38] sm:$0xff]  ;;  %p574_p12 = scmp.ne.s32.totalorder %s572_s21, %s573_s29 }
  0x18   : > { %340 = vmatpush.msra.mxu1 %v333_v3  ;;  %v285_v8 = vld [vmem:[%s271_s10] sm:$0xff]  ;;  %v325_v14 = vld [vmem:[%s835_s3 + $0x30] sm:$0xff]  ;;  %v324_v15 = vld [vmem:[%s835_s3 + $0x28] sm:$0xff]  ;;  %s493_s10 = sshll.u32 %s265_s9, 3  ;;  %p578_p1 = scmp.lt.s32.totalorder %s572_s21, %s837_s5 }
  0x19   : > { %312 = vmatpush.msra.mxu0 %v287_v4  ;;  %v327_v12 = vld [vmem:[%s835_s3 + $0x40] sm:$0xff]  ;;  %v322_v17 = vld [vmem:[%s835_s3 + $0x18] sm:$0xff]  ;;  %v321_v18 = vld [vmem:[%s835_s3 + $0x10] sm:$0xff]  ;;  %s267_s17 = scalar_lea.vmem [#allocation2], %s493_s10  ;;  %p575_p13 = pnand %p574_p12, %p707_p4 }
  0x1a   : > { %341 = vmatpush.msra.mxu1 %v332_v5  ;;  %v323_v16 = vld [vmem:[%s835_s3 + $0x20] sm:$0xff]  ;;  %v320_v19 = vld [vmem:[%s835_s3 + $0x8] sm:$0xff]  ;;  %s373_s24 = sshll.u32 %s267_s17, 4  ;;  %s577_s10 = scalar_lea.hbm %s837_s5, 16  ;;  %s374_s24 = int_to_ptr.vmem [resolvable:$true] %s373_s24 }
  0x1b   : > { %313 = vmatpush.msra.mxu0 %v286_v6  ;;  %v319_v20 = vld [vmem:[%s835_s3] sm:$0xff]  ;;  %p576_p0 = pneg %p575_p13  ;;  %p579_p2 = scmp.lt.s32.totalorder %s577_s10, %s573_s29 }
  0x1c   : > { %495 = vmatmul.msk.f32.vlgmr.msra.gmra.mxu0 %vm294_vm0, %v285_v8  ;;  %342 = vmatpush.msra.mxu1 %v331_v7  ;;  %v555_v21 = vld [vmem:[%s834_s2] ss:$0 sm:$0xff] }
  0x1d   : > { %v556_v25 = vld [vmem:[%s836_s4] ss:$0 sm:$0xff]  ;;  %p580_p3 = por %p579_p2, %p578_p1 }
  0x1e   : > { %343 = vmatpush.msra.mxu1 %v330_v9 }
  0x1f   : > { %p581_p5 = pnand %p580_p3, %p576_p0 }
  0x20   : > { %344 = vmatpush.msra.mxu1 %v329_v10 }
  0x22   : > { %345 = vmatpush.msra.mxu1 %v328_v11 }
  0x24   : > { %346 = vmatpush.msra.mxu1 %v327_v12 }
  0x26   : > { %347 = vmatpush.msra.mxu1 %v326_v13 }
  0x28   : > { %348 = vmatpush.msra.mxu1 %v325_v14 }
  0x2a   : > { %349 = vmatpush.msra.mxu1 %v324_v15 }
  0x2c   : > { %350 = vmatpush.msra.mxu1 %v323_v16 }
  0x2e   : > { %351 = vmatpush.msra.mxu1 %v322_v17 }
  0x30   : > { %352 = vmatpush.msra.mxu1 %v321_v18 }
  0x32   : > { %353 = vmatpush.msra.mxu1 %v320_v19 }
  0x34   : > { %354 = vmatpush.msra.mxu1 %v319_v20 }
  0x99   : > { %v315_v22 = vpop.f32.mrf.mxu0 }
  0x9a   : > { %v316_v23 = vadd.f32 %v555_v21, %v315_v22 }
  0x9c   : > { %v318_v24 = vmax.f32 %v316_v23, 0.0 }
  0x9e   : > { %355 = vmatmul.f32.vlgmr.msra.gmra.mxu1 %v318_v24 }
 0x11b   : > { %v356_v26 = vpop.f32.mrf.mxu1 }
 0x11c   : > { %v357_v27 = vadd.f32 %v556_v25, %v356_v26 }
 0x11e   : > { %359 = vst.msk [vmem:[%s267_s17] sm:$0xff] %vm294_vm0, %v357_v27 }
 0x11f   : > { %584 = shalt.err (!%p581_p5)
}
 0x120   : > { %500 = dma.vmem_to_hbm [thread:$0]  (%p707_p4), %s374_s24, 128, %s376_s25, %s361_s27  }
 0x121 PF: > { %p506_p6 = scmp.ge.s32.totalorder %s635_s23, 2  ;;  %s387_s9 = sand.u32 1, %s615_s18  }
 0x122   : > { %s388_s13 = scalar_lea.sflag [#allocation3], %s387_s9 }
 0x123   : > { %p503_p7 = pnand %p506_p6, %p714_p8 }
 0x125   : > { %p504_p9 = pneg %p503_p7 }
 0x127   : > { %610 = dma.done.wait (%p504_p9), %s388_s13, 128  }
 0x128   : > { %612 = vsyncadd (%p504_p9), %s388_s13, 4294967168  ;;  %s18_s23 = sadd.s32 1, %s635_s23   ;;  %s840_s18 = smov %s619_s19 }
 0x129   : > { %p15_p10 = scmp.ge.s32.totalorder %s18_s23, 4   ;;  %s841_s19 = smov %s623_s20 }
 0x12a   : > { %s842_s20 = smov %s720_s6  ;;  %s843_s21 = smov %s631_s22 }
 0x12b   : > { %s844_s22 = smov %s846_s26  ;;  %17 = sbr.rel (!%p15_p10) target bundleno = 4 (0x4), region = 84 }
 0x130   :  { %394 = vsyncpa [#allocation3], 1 }
 0x131   :  { %396 = vsyncpa [#allocation3 + $0x1], 1 }

</bundles_post_ra>
